<compile_context>
chip_gen: v7x
topology: tpu7x:2x2x1
jax: 0.10.0
libtpu: 0.0.40
codegen_flags: <defaults>
</compile_context>

<pallas_src>
import jax
import jax.numpy as jnp
from jax.experimental import pallas as pl
from jax.experimental.pallas import tpu as pltpu


def _weight_spec(block_shape, index_map):
    """BlockSpec for a grid-invariant operand: single-buffer it (halves its VMEM
    footprint; the pipeline elides re-fetch since the block index never changes)."""
    try:
        return pl.BlockSpec(block_shape, index_map, pipeline_mode=pl.Buffered(1))
    except (TypeError, AttributeError):  # older jax: fall back to default buffering
        return pl.BlockSpec(block_shape, index_map)


# ----------------------------------------------------------------------------
# (B) fused matmul + bias, tiled over rows: out = x @ w + b.
#     Used for the output (fc) projection, which has no time dependence.
# ----------------------------------------------------------------------------
def _matmul_bias_kernel(x_ref, w_ref, b_ref, o_ref):
    o_ref[...] = (jnp.dot(x_ref[...], w_ref[...],
                          preferred_element_type=jnp.float32)
                  + b_ref[...]).astype(o_ref.dtype)


def _matmul_bias(x, w, b, *, block_m=1024):
    """x: (M, K) bf16, w: (K, N) bf16, b: (1, N) f32 -> (M, N) f32."""
    M, K = x.shape
    N = w.shape[1]
    tm = M if M <= block_m else block_m
    grid_m = pl.cdiv(M, tm)
    return pl.pallas_call(
        _matmul_bias_kernel,
        out_shape=jax.ShapeDtypeStruct((M, N), jnp.float32),
        grid_spec=pltpu.PrefetchScalarGridSpec(
            num_scalar_prefetch=0,
            grid=(grid_m,),
            in_specs=[
                pl.BlockSpec((tm, K), lambda i: (i, 0)),
                _weight_spec((K, N), lambda i: (0, 0)),
                _weight_spec((1, N), lambda i: (0, 0)),
            ],
            out_specs=pl.BlockSpec((tm, N), lambda i: (i, 0)),
        ),
        compiler_params=pltpu.CompilerParams(
            dimension_semantics=("parallel",),
            vmem_limit_bytes=32 * 1024 * 1024,
        ),
    )(x, w, b)


# ----------------------------------------------------------------------------
# (A) the sequential recurrence with the input projection fused in.
#     Grid = (batch blocks [parallel], time blocks [arbitrary]).
#     Blocks are time-major 2-D: rows ordered (t, b_local), row index t*TB + b.
# ----------------------------------------------------------------------------
def _rnn_recurrence_kernel(x_ref, wih_ref, whh_ref, brnn_ref, h_out_ref, h_carry):
    # x_ref:     (TT*TB, E)  bf16   embedded inputs, time-major within the block
    # wih_ref:   (E, H)      bf16   W_ih^T
    # whh_ref:   (H, H)      bf16   W_hh^T
    # brnn_ref:  (1, H)      f32    b_ih + b_hh (pre-folded)
    # h_out_ref: (TT*TB, H)  bf16   hidden states for this block
    # h_carry:   (TB, H)     f32    hidden state carried across time blocks
    @pl.when(pl.program_id(1) == 0)
    def _():
        h_carry[...] = jnp.zeros_like(h_carry)

    tb = h_carry.shape[0]
    tt_steps = h_out_ref.shape[0] // tb

    # (a) block-level input projection: ONE (TT*TB, E) @ (E, H) GEMM + bias,
    #     f32 accumulate, off the serial critical path.
    pre = (jnp.dot(x_ref[...], wih_ref[...], preferred_element_type=jnp.float32)
           + brnn_ref[...])

    # (b) serial recurrence: exactly one (TB, H) @ (H, H) matmul per time step.
    #     TT is capped (<= 32) in the wrapper, so this unroll stays vreg-friendly.
    w_hh = whh_ref[...]
    h = h_carry[...]
    for tt in range(tt_steps):
        h = jnp.tanh(pre[tt * tb:(tt + 1) * tb, :]
                     + jnp.dot(h.astype(jnp.bfloat16), w_hh,
                               preferred_element_type=jnp.float32))
        h_out_ref[tt * tb:(tt + 1) * tb, :] = h.astype(h_out_ref.dtype)
    h_carry[...] = h


def simple_rnn_with_embedding(embedded, params, *, block_t=None, block_b=None):
    """embedded: (B, T, E) float32, batch-first.  Returns (B, T, O) float32."""
    B, T, E = embedded.shape
    w_ih_t = params["w_ih_t"]   # (E, H)  bf16
    w_hh_t = params["w_hh_t"]   # (H, H)  bf16
    b_rnn = params["b_rnn"]     # (1, H)  f32  = b_ih + b_hh
    w_fc_t = params["w_fc_t"]   # (H, O)  bf16
    b_fc = params["b_fc"]       # (1, O)  f32
    H = w_hh_t.shape[0]
    O = w_fc_t.shape[1]

    # --- block sizing (review: TT capped at 32; TB = B on v5e/v6e, B//2 on v7x).
    TB = B if block_b is None else block_b
    if block_t is None:
        TT = 1
        for cand in range(1, min(T, 32) + 1):
            if T % cand == 0:
                TT = cand
    else:
        TT = block_t
    assert B % TB == 0, "batch block must divide B"
    assert T % TT == 0, "time block must divide T"
    assert TT == T or (TT * TB) % 8 == 0, "partial time blocks need TT*TB % 8 == 0"
    NB = B // TB

    # --- time-major, batch-blocked layout: (NB, T*TB, E), row = t*TB + b_local.
    #     Single XLA transpose outside the kernel; inside, every per-step access
    #     is a contiguous leading-axis slice.
    xt = (embedded.astype(jnp.bfloat16)
          .reshape(NB, TB, T, E)
          .transpose(0, 2, 1, 3)
          .reshape(NB, T * TB, E))

    # --- (A) fused input-projection + recurrence.  Hidden states emitted in bf16.
    h = pl.pallas_call(
        _rnn_recurrence_kernel,
        out_shape=jax.ShapeDtypeStruct((NB, T * TB, H), jnp.bfloat16),
        grid_spec=pltpu.PrefetchScalarGridSpec(
            num_scalar_prefetch=0,
            grid=(NB, T // TT),
            in_specs=[
                pl.BlockSpec((pl.Squeezed(), TT * TB, E), lambda b, t: (b, t, 0)),
                _weight_spec((E, H), lambda b, t: (0, 0)),   # W_ih^T (grid-invariant)
                _weight_spec((H, H), lambda b, t: (0, 0)),   # W_hh^T (grid-invariant)
                _weight_spec((1, H), lambda b, t: (0, 0)),   # folded RNN bias
            ],
            out_specs=pl.BlockSpec((pl.Squeezed(), TT * TB, H),
                                   lambda b, t: (b, t, 0)),
            scratch_shapes=[pltpu.VMEM((TB, H), jnp.float32)],   # carried hidden state
        ),
        compiler_params=pltpu.CompilerParams(
            # batch blocks are independent (v7x megacore can shard them across TCs);
            # the time axis carries the recurrence -> "arbitrary".
            dimension_semantics=("parallel", "arbitrary"),
            vmem_limit_bytes=32 * 1024 * 1024,
        ),
    )(xt, w_ih_t, w_hh_t, b_rnn)

    # --- (B) output projection for ALL time steps: one large GEMM, off the serial path.
    out2d = _matmul_bias(h.reshape(NB * T * TB, H), w_fc_t, b_fc)        # (rows, O) f32
    out = (out2d.reshape(NB, T, TB, O)
           .transpose(0, 2, 1, 3)
           .reshape(B, T, O))
    return out


def init_params(key, embedding_dim, hidden_size, output_size):
    """Deterministic init mimicking PyTorch defaults (uniform +-1/sqrt(fan)).
    Weights are stored pre-transposed and in bf16 (MXU-native); biases in f32."""
    k = jax.random.split(key, 6)
    s = 1.0 / jnp.sqrt(hidden_size)
    w_ih = jax.random.uniform(k[0], (hidden_size, embedding_dim), jnp.float32, -s, s)
    w_hh = jax.random.uniform(k[1], (hidden_size, hidden_size), jnp.float32, -s, s)
    b_ih = jax.random.uniform(k[2], (hidden_size,), jnp.float32, -s, s)
    b_hh = jax.random.uniform(k[3], (hidden_size,), jnp.float32, -s, s)
    w_fc = jax.random.uniform(k[4], (output_size, hidden_size), jnp.float32, -s, s)
    b_fc = jax.random.uniform(k[5], (output_size,), jnp.float32, -s, s)
    return {
        "w_ih_t": w_ih.T.astype(jnp.bfloat16),      # (E, H)
        "w_hh_t": w_hh.T.astype(jnp.bfloat16),      # (H, H)
        "b_rnn": (b_ih + b_hh)[None, :],             # (1, H) f32, biases pre-folded
        "w_fc_t": w_fc.T.astype(jnp.bfloat16),      # (H, O)
        "b_fc": b_fc[None, :],                       # (1, O) f32
    }


def reference_forward(embedded, params):
    """Pure-JAX f32 reference (lax.scan over time), using the same (bf16-rounded)
    weights so the only kernel-vs-reference delta is bf16 activation rounding."""
    w_ih = params["w_ih_t"].astype(jnp.float32)
    w_hh = params["w_hh_t"].astype(jnp.float32)
    w_fc = params["w_fc_t"].astype(jnp.float32)
    b_rnn, b_fc = params["b_rnn"], params["b_fc"]
    B = embedded.shape[0]
    H = w_hh.shape[0]
    h0 = jnp.zeros((B, H), jnp.float32)

    def step(h, x_t):
        h_new = jnp.tanh(x_t @ w_ih + b_rnn + h @ w_hh)
        return h_new, h_new @ w_fc + b_fc

    _, outs = jax.lax.scan(step, h0, jnp.transpose(embedded, (1, 0, 2)))
    return jnp.transpose(outs, (1, 0, 2))


if __name__ == "__main__":
    batch, seq, embedding_dim = 2, 8, 16
    hidden_size, output_size = 32, 8

    key = jax.random.PRNGKey(0)
    k_x, k_p = jax.random.split(key)
    embedded = jax.random.normal(k_x, (batch, seq, embedding_dim), jnp.float32)
    params = init_params(k_p, embedding_dim, hidden_size, output_size)

    out = jax.block_until_ready(simple_rnn_with_embedding(embedded, params))
    ref = reference_forward(embedded, params)

    assert out.shape == (batch, seq, output_size)
    max_err = float(jnp.max(jnp.abs(out - ref)))
    # bf16 MXU operands -> loosened tolerance (review correctness note).
    assert jnp.allclose(out, ref, atol=3e-2, rtol=3e-2), \
        f"mismatch vs reference (max abs err {max_err})"
    print("KERNEL_OK")
</pallas_src>

<mosaic_0001>
module attributes {stable_mosaic.version = 11 : i64} {
  func.func @_rnn_recurrence_kernel(%arg0: i32, %arg1: i32, %arg2: memref<1x16x16xbf16, #tpu.memory_space<vmem>>, %arg3: memref<16x32xbf16, #tpu.memory_space<vmem>>, %arg4: memref<32x32xbf16, #tpu.memory_space<vmem>>, %arg5: memref<1x32xf32, #tpu.memory_space<vmem>>, %arg6: memref<1x16x32xbf16, #tpu.memory_space<vmem>>, %arg7: memref<2x32xf32, #tpu.memory_space<vmem>>) attributes {dimension_semantics = [#tpu.dimension_semantics<parallel>, #tpu.dimension_semantics<arbitrary>], iteration_bounds = array<i64: 1, 1>, scalar_prefetch = 0 : i64, scratch_operands = 1 : i64, tpu.core_type = #tpu.core_type<tc>, window_params = [{transform_indices = @transform_0, window_bounds = array<i64: 1, 16, 16>}, {pipeline_mode = #tpu.pipeline_mode<synchronous>, transform_indices = @transform_1, window_bounds = array<i64: 16, 32>}, {pipeline_mode = #tpu.pipeline_mode<synchronous>, transform_indices = @transform_2, window_bounds = array<i64: 32, 32>}, {pipeline_mode = #tpu.pipeline_mode<synchronous>, transform_indices = @transform_3, window_bounds = array<i64: 1, 32>}, {transform_indices = @transform_4, window_bounds = array<i64: 1, 16, 32>}]} {
    %c0_i32 = arith.constant 0 : i32
    %0 = arith.cmpi eq, %arg1, %c0_i32 : i32
    %1 = arith.extui %0 : i1 to i32
    %c0_i32_0 = arith.constant 0 : i32
    %2 = arith.cmpi ne, %1, %c0_i32_0 : i32
    scf.if %2 {
      %cst_38 = arith.constant 0.000000e+00 : f32
      %85 = vector.broadcast %cst_38 : f32 to vector<2x32xf32>
      %c0_39 = arith.constant 0 : index
      %c0_40 = arith.constant 0 : index
      %86 = vector.load %arg7[%c0_39, %c0_40] : memref<2x32xf32, #tpu.memory_space<vmem>>, vector<2x32xf32>
      tpu.vector_store %arg7[%c0_39, %c0_40], %85 {strides = array<i32>} : memref<2x32xf32, #tpu.memory_space<vmem>>, vector<2x32xf32>,
    } else {
    }
    %c0 = arith.constant 0 : index
    %c0_1 = arith.constant 0 : index
    %c0_2 = arith.constant 0 : index
    %3 = vector.load %arg2[%c0, %c0_1, %c0_2] : memref<1x16x16xbf16, #tpu.memory_space<vmem>>, vector<1x16x16xbf16>
    %4 = vector.shape_cast %3 : vector<1x16x16xbf16> to vector<16x16xbf16>
    %c0_3 = arith.constant 0 : index
    %c0_4 = arith.constant 0 : index
    %5 = vector.load %arg3[%c0_3, %c0_4] : memref<16x32xbf16, #tpu.memory_space<vmem>>, vector<16x32xbf16>
    %cst = arith.constant dense<0.000000e+00> : vector<16x32xf32>
    %6 = tpu.matmul %4, %5, %cst {dimension_numbers = #tpu.dot_dimension_numbers<[1], [0], [0], [1], [0, 0, 1, 1], [], []>} : vector<16x16xbf16>, vector<16x32xbf16>, vector<16x32xf32> -> vector<16x32xf32>
    %c0_5 = arith.constant 0 : index
    %c0_6 = arith.constant 0 : index
    %7 = vector.load %arg5[%c0_5, %c0_6] : memref<1x32xf32, #tpu.memory_space<vmem>>, vector<1x32xf32>
    %8 = vector.broadcast %7 : vector<1x32xf32> to vector<16x32xf32>
    %9 = arith.addf %6, %8 : vector<16x32xf32>
    %c0_7 = arith.constant 0 : index
    %c0_8 = arith.constant 0 : index
    %10 = vector.load %arg4[%c0_7, %c0_8] : memref<32x32xbf16, #tpu.memory_space<vmem>>, vector<32x32xbf16>
    %c0_9 = arith.constant 0 : index
    %c0_10 = arith.constant 0 : index
    %11 = vector.load %arg7[%c0_9, %c0_10] : memref<2x32xf32, #tpu.memory_space<vmem>>, vector<2x32xf32>
    %12 = vector.extract_strided_slice %9 {offsets = [0, 0], sizes = [2, 32], strides = [1, 1]} : vector<16x32xf32> to vector<2x32xf32>
    %13 = arith.truncf %11 : vector<2x32xf32> to vector<2x32xbf16>
    %cst_11 = arith.constant dense<0.000000e+00> : vector<2x32xf32>
    %14 = tpu.matmul %13, %10, %cst_11 {dimension_numbers = #tpu.dot_dimension_numbers<[1], [0], [0], [1], [0, 0, 1, 1], [], []>} : vector<2x32xbf16>, vector<32x32xbf16>, vector<2x32xf32> -> vector<2x32xf32>
    %15 = arith.addf %12, %14 : vector<2x32xf32>
    %16 = math.tanh %15 : vector<2x32xf32>
    %17 = arith.truncf %16 : vector<2x32xf32> to vector<2x32xbf16>
    %c0_12 = arith.constant 0 : index
    %c0_13 = arith.constant 0 : index
    %c0_14 = arith.constant 0 : index
    %18 = vector.load %arg6[%c0_12, %c0_13, %c0_14] : memref<1x16x32xbf16, #tpu.memory_space<vmem>>, vector<1x2x32xbf16>
    %19 = vector.shape_cast %18 : vector<1x2x32xbf16> to vector<2x32xbf16>
    %20 = vector.shape_cast %17 : vector<2x32xbf16> to vector<1x2x32xbf16>
    tpu.vector_store %arg6[%c0_12, %c0_13, %c0_14], %20 {strides = array<i32>} : memref<1x16x32xbf16, #tpu.memory_space<vmem>>, vector<1x2x32xbf16>,
    %21 = vector.extract_strided_slice %9 {offsets = [2, 0], sizes = [2, 32], strides = [1, 1]} : vector<16x32xf32> to vector<2x32xf32>
    %22 = arith.truncf %16 : vector<2x32xf32> to vector<2x32xbf16>
    %cst_15 = arith.constant dense<0.000000e+00> : vector<2x32xf32>
    %23 = tpu.matmul %22, %10, %cst_15 {dimension_numbers = #tpu.dot_dimension_numbers<[1], [0], [0], [1], [0, 0, 1, 1], [], []>} : vector<2x32xbf16>, vector<32x32xbf16>, vector<2x32xf32> -> vector<2x32xf32>
    %24 = arith.addf %21, %23 : vector<2x32xf32>
    %25 = math.tanh %24 : vector<2x32xf32>
    %26 = arith.truncf %25 : vector<2x32xf32> to vector<2x32xbf16>
    %c0_16 = arith.constant 0 : index
    %c2 = arith.constant 2 : index
    %c0_17 = arith.constant 0 : index
    %27 = vector.load %arg6[%c0_16, %c2, %c0_17] : memref<1x16x32xbf16, #tpu.memory_space<vmem>>, vector<1x2x32xbf16>
    %28 = vector.shape_cast %27 : vector<1x2x32xbf16> to vector<2x32xbf16>
    %29 = vector.shape_cast %26 : vector<2x32xbf16> to vector<1x2x32xbf16>
    tpu.vector_store %arg6[%c0_16, %c2, %c0_17], %29 {strides = array<i32>} : memref<1x16x32xbf16, #tpu.memory_space<vmem>>, vector<1x2x32xbf16>,
    %30 = vector.extract_strided_slice %9 {offsets = [4, 0], sizes = [2, 32], strides = [1, 1]} : vector<16x32xf32> to vector<2x32xf32>
    %31 = arith.truncf %25 : vector<2x32xf32> to vector<2x32xbf16>
    %cst_18 = arith.constant dense<0.000000e+00> : vector<2x32xf32>
    %32 = tpu.matmul %31, %10, %cst_18 {dimension_numbers = #tpu.dot_dimension_numbers<[1], [0], [0], [1], [0, 0, 1, 1], [], []>} : vector<2x32xbf16>, vector<32x32xbf16>, vector<2x32xf32> -> vector<2x32xf32>
    %33 = arith.addf %30, %32 : vector<2x32xf32>
    %34 = math.tanh %33 : vector<2x32xf32>
    %35 = arith.truncf %34 : vector<2x32xf32> to vector<2x32xbf16>
    %c0_19 = arith.constant 0 : index
    %c4 = arith.constant 4 : index
    %c0_20 = arith.constant 0 : index
    %36 = vector.load %arg6[%c0_19, %c4, %c0_20] : memref<1x16x32xbf16, #tpu.memory_space<vmem>>, vector<1x2x32xbf16>
    %37 = vector.shape_cast %36 : vector<1x2x32xbf16> to vector<2x32xbf16>
    %38 = vector.shape_cast %35 : vector<2x32xbf16> to vector<1x2x32xbf16>
    tpu.vector_store %arg6[%c0_19, %c4, %c0_20], %38 {strides = array<i32>} : memref<1x16x32xbf16, #tpu.memory_space<vmem>>, vector<1x2x32xbf16>,
    %39 = vector.extract_strided_slice %9 {offsets = [6, 0], sizes = [2, 32], strides = [1, 1]} : vector<16x32xf32> to vector<2x32xf32>
    %40 = arith.truncf %34 : vector<2x32xf32> to vector<2x32xbf16>
    %cst_21 = arith.constant dense<0.000000e+00> : vector<2x32xf32>
    %41 = tpu.matmul %40, %10, %cst_21 {dimension_numbers = #tpu.dot_dimension_numbers<[1], [0], [0], [1], [0, 0, 1, 1], [], []>} : vector<2x32xbf16>, vector<32x32xbf16>, vector<2x32xf32> -> vector<2x32xf32>
    %42 = arith.addf %39, %41 : vector<2x32xf32>
    %43 = math.tanh %42 : vector<2x32xf32>
    %44 = arith.truncf %43 : vector<2x32xf32> to vector<2x32xbf16>
    %c0_22 = arith.constant 0 : index
    %c6 = arith.constant 6 : index
    %c0_23 = arith.constant 0 : index
    %45 = vector.load %arg6[%c0_22, %c6, %c0_23] : memref<1x16x32xbf16, #tpu.memory_space<vmem>>, vector<1x2x32xbf16>
    %46 = vector.shape_cast %45 : vector<1x2x32xbf16> to vector<2x32xbf16>
    %47 = vector.shape_cast %44 : vector<2x32xbf16> to vector<1x2x32xbf16>
    tpu.vector_store %arg6[%c0_22, %c6, %c0_23], %47 {strides = array<i32>} : memref<1x16x32xbf16, #tpu.memory_space<vmem>>, vector<1x2x32xbf16>,
    %48 = vector.extract_strided_slice %9 {offsets = [8, 0], sizes = [2, 32], strides = [1, 1]} : vector<16x32xf32> to vector<2x32xf32>
    %49 = arith.truncf %43 : vector<2x32xf32> to vector<2x32xbf16>
    %cst_24 = arith.constant dense<0.000000e+00> : vector<2x32xf32>
    %50 = tpu.matmul %49, %10, %cst_24 {dimension_numbers = #tpu.dot_dimension_numbers<[1], [0], [0], [1], [0, 0, 1, 1], [], []>} : vector<2x32xbf16>, vector<32x32xbf16>, vector<2x32xf32> -> vector<2x32xf32>
    %51 = arith.addf %48, %50 : vector<2x32xf32>
    %52 = math.tanh %51 : vector<2x32xf32>
    %53 = arith.truncf %52 : vector<2x32xf32> to vector<2x32xbf16>
    %c0_25 = arith.constant 0 : index
    %c8 = arith.constant 8 : index
    %c0_26 = arith.constant 0 : index
    %54 = vector.load %arg6[%c0_25, %c8, %c0_26] : memref<1x16x32xbf16, #tpu.memory_space<vmem>>, vector<1x2x32xbf16>
    %55 = vector.shape_cast %54 : vector<1x2x32xbf16> to vector<2x32xbf16>
    %56 = vector.shape_cast %53 : vector<2x32xbf16> to vector<1x2x32xbf16>
    tpu.vector_store %arg6[%c0_25, %c8, %c0_26], %56 {strides = array<i32>} : memref<1x16x32xbf16, #tpu.memory_space<vmem>>, vector<1x2x32xbf16>,
    %57 = vector.extract_strided_slice %9 {offsets = [10, 0], sizes = [2, 32], strides = [1, 1]} : vector<16x32xf32> to vector<2x32xf32>
    %58 = arith.truncf %52 : vector<2x32xf32> to vector<2x32xbf16>
    %cst_27 = arith.constant dense<0.000000e+00> : vector<2x32xf32>
    %59 = tpu.matmul %58, %10, %cst_27 {dimension_numbers = #tpu.dot_dimension_numbers<[1], [0], [0], [1], [0, 0, 1, 1], [], []>} : vector<2x32xbf16>, vector<32x32xbf16>, vector<2x32xf32> -> vector<2x32xf32>
    %60 = arith.addf %57, %59 : vector<2x32xf32>
    %61 = math.tanh %60 : vector<2x32xf32>
    %62 = arith.truncf %61 : vector<2x32xf32> to vector<2x32xbf16>
    %c0_28 = arith.constant 0 : index
    %c10 = arith.constant 10 : index
    %c0_29 = arith.constant 0 : index
    %63 = vector.load %arg6[%c0_28, %c10, %c0_29] : memref<1x16x32xbf16, #tpu.memory_space<vmem>>, vector<1x2x32xbf16>
    %64 = vector.shape_cast %63 : vector<1x2x32xbf16> to vector<2x32xbf16>
    %65 = vector.shape_cast %62 : vector<2x32xbf16> to vector<1x2x32xbf16>
    tpu.vector_store %arg6[%c0_28, %c10, %c0_29], %65 {strides = array<i32>} : memref<1x16x32xbf16, #tpu.memory_space<vmem>>, vector<1x2x32xbf16>,
    %66 = vector.extract_strided_slice %9 {offsets = [12, 0], sizes = [2, 32], strides = [1, 1]} : vector<16x32xf32> to vector<2x32xf32>
    %67 = arith.truncf %61 : vector<2x32xf32> to vector<2x32xbf16>
    %cst_30 = arith.constant dense<0.000000e+00> : vector<2x32xf32>
    %68 = tpu.matmul %67, %10, %cst_30 {dimension_numbers = #tpu.dot_dimension_numbers<[1], [0], [0], [1], [0, 0, 1, 1], [], []>} : vector<2x32xbf16>, vector<32x32xbf16>, vector<2x32xf32> -> vector<2x32xf32>
    %69 = arith.addf %66, %68 : vector<2x32xf32>
    %70 = math.tanh %69 : vector<2x32xf32>
    %71 = arith.truncf %70 : vector<2x32xf32> to vector<2x32xbf16>
    %c0_31 = arith.constant 0 : index
    %c12 = arith.constant 12 : index
    %c0_32 = arith.constant 0 : index
    %72 = vector.load %arg6[%c0_31, %c12, %c0_32] : memref<1x16x32xbf16, #tpu.memory_space<vmem>>, vector<1x2x32xbf16>
    %73 = vector.shape_cast %72 : vector<1x2x32xbf16> to vector<2x32xbf16>
    %74 = vector.shape_cast %71 : vector<2x32xbf16> to vector<1x2x32xbf16>
    tpu.vector_store %arg6[%c0_31, %c12, %c0_32], %74 {strides = array<i32>} : memref<1x16x32xbf16, #tpu.memory_space<vmem>>, vector<1x2x32xbf16>,
    %75 = vector.extract_strided_slice %9 {offsets = [14, 0], sizes = [2, 32], strides = [1, 1]} : vector<16x32xf32> to vector<2x32xf32>
    %76 = arith.truncf %70 : vector<2x32xf32> to vector<2x32xbf16>
    %cst_33 = arith.constant dense<0.000000e+00> : vector<2x32xf32>
    %77 = tpu.matmul %76, %10, %cst_33 {dimension_numbers = #tpu.dot_dimension_numbers<[1], [0], [0], [1], [0, 0, 1, 1], [], []>} : vector<2x32xbf16>, vector<32x32xbf16>, vector<2x32xf32> -> vector<2x32xf32>
    %78 = arith.addf %75, %77 : vector<2x32xf32>
    %79 = math.tanh %78 : vector<2x32xf32>
    %80 = arith.truncf %79 : vector<2x32xf32> to vector<2x32xbf16>
    %c0_34 = arith.constant 0 : index
    %c14 = arith.constant 14 : index
    %c0_35 = arith.constant 0 : index
    %81 = vector.load %arg6[%c0_34, %c14, %c0_35] : memref<1x16x32xbf16, #tpu.memory_space<vmem>>, vector<1x2x32xbf16>
    %82 = vector.shape_cast %81 : vector<1x2x32xbf16> to vector<2x32xbf16>
    %83 = vector.shape_cast %80 : vector<2x32xbf16> to vector<1x2x32xbf16>
    tpu.vector_store %arg6[%c0_34, %c14, %c0_35], %83 {strides = array<i32>} : memref<1x16x32xbf16, #tpu.memory_space<vmem>>, vector<1x2x32xbf16>,
    %c0_36 = arith.constant 0 : index
    %c0_37 = arith.constant 0 : index
    %84 = vector.load %arg7[%c0_36, %c0_37] : memref<2x32xf32, #tpu.memory_space<vmem>>, vector<2x32xf32>
    tpu.vector_store %arg7[%c0_36, %c0_37], %79 {strides = array<i32>} : memref<2x32xf32, #tpu.memory_space<vmem>>, vector<2x32xf32>,
    return
  }
  func.func @transform_0(%arg0: i32, %arg1: i32) -> (i32, i32, i32) {
    %c0_i32 = arith.constant 0 : i32
    %c0_i32_0 = arith.constant 0 : i32
    return %arg0, %arg1, %c0_i32 : i32, i32, i32
  }
  func.func @transform_1(%arg0: i32, %arg1: i32) -> (i32, i32) {
    %c0_i32 = arith.constant 0 : i32
    %c0_i32_0 = arith.constant 0 : i32
    %c0_i32_1 = arith.constant 0 : i32
    return %c0_i32, %c0_i32_0 : i32, i32
  }
  func.func @transform_2(%arg0: i32, %arg1: i32) -> (i32, i32) {
    %c0_i32 = arith.constant 0 : i32
    %c0_i32_0 = arith.constant 0 : i32
    %c0_i32_1 = arith.constant 0 : i32
    return %c0_i32, %c0_i32_0 : i32, i32
  }
  func.func @transform_3(%arg0: i32, %arg1: i32) -> (i32, i32) {
    %c0_i32 = arith.constant 0 : i32
    %c0_i32_0 = arith.constant 0 : i32
    %c0_i32_1 = arith.constant 0 : i32
    return %c0_i32, %c0_i32_0 : i32, i32
  }
  func.func @transform_4(%arg0: i32, %arg1: i32) -> (i32, i32, i32) {
    %c0_i32 = arith.constant 0 : i32
    %c0_i32_0 = arith.constant 0 : i32
    return %arg0, %arg1, %c0_i32 : i32, i32, i32
  }
}

</mosaic_0001>

<bundles_post_ra>
// kernel: tpu_custom_call.1
= control target key start
LH: loop header
LB: loop body
LE: loop exit
PB: predicated region body
PF: predicated region fallthrough
CT: control target
= control target key end

     0   :  { %9 = vsyncpa [#allocation4], 0  ;;  %s993_s0 = inlined_call_operand.hbm [shape: bf16[1,16,16], index: 0, kind: input, shape index: {}]   ;;  %s994_s1 = inlined_call_operand.hbm [shape: bf16[16,32], index: 1, kind: input, shape index: {}]   ;;  %s995_s2 = inlined_call_operand.hbm [shape: bf16[32,32], index: 2, kind: input, shape index: {}]   ;;  %s996_s3 = inlined_call_operand.vmem [shape: f32[1,32], index: 3, kind: input, shape index: {}]   ;;  %s997_s4 = inlined_call_operand.hbm [shape: bf16[1,16,32], index: 4, kind: output, shape index: {}]  }
   0x1   :  { %10 = vsyncpa [#allocation7], 0 }
   0x2   :  { %11 = vsyncpa [#allocation5], 0  ;;  %s812_s15 = smov [#allocation6]   ;;  %s813_s17 = smov [#allocation3]  }
   0x3   :  { %s29_s16 = sshll.u32 %s812_s15, 4  ;;  %s17_s18 = sshll.u32 %s813_s17, 4  ;;  %s30_s16 = int_to_ptr.vmem [resolvable:$true] %s29_s16  ;;  %s845_s18 = int_to_ptr.vmem [resolvable:$true] %s17_s18 }
   0x4   :  { %s718_s21 = scalar_lea.hbm %s994_s1, 128 }
   0x5   :  { %p719_p0 = scmp.ne.s32.totalorder %s994_s1, %s718_s21  ;;  %p722_p1 = scmp.lt.u32.totalorder %s718_s21, %s994_s1 }
   0x7   :  { %p724_p2 = pnand %p722_p1, %p719_p0 }
   0x9   :  { %727 = shalt.err (!%p724_p2)
}
   0xa   :  { %s728_s26 = scalar_lea.vmem %s30_s16, 128  ;;  %p733_p4 = scmp.lt.s32.totalorder %s30_s16, %s30_s16 }
   0xb   :  { %p729_p3 = scmp.ne.s32.totalorder %s30_s16, %s728_s26  ;;  %p734_p5 = scmp.lt.s32.totalorder %s728_s26, %s728_s26 }
   0xd   :  { %p735_p6 = por %p734_p5, %p733_p4 }
   0xf   :  { %p736_p7 = pnand %p735_p6, %p729_p3 }
  0x11   :  { %739 = shalt.err (!%p736_p7)
}
  0x12   :  { %s814_s27 = smov 64   ;;  %s815_s28 = smov 4  }
  0x13   :  { %35 = dma.hbm_to_vmem [thread:$0]  %s994_s1, 128, %s30_s16, [#allocation7], %s814_s27, %s814_s27, %s815_s28  }
  0x14   :  { %s740_s7 = scalar_lea.hbm %s993_s0, 128 }
  0x15   :  { %p741_p8 = scmp.ne.s32.totalorder %s993_s0, %s740_s7  ;;  %p744_p9 = scmp.lt.u32.totalorder %s740_s7, %s993_s0 }
  0x17   :  { %p746_p10 = pnand %p744_p9, %p741_p8 }
  0x19   :  { %749 = shalt.err (!%p746_p10)
}
  0x1a   :  { %s750_s12 = scalar_lea.vmem %s845_s18, 128  ;;  %p755_p12 = scmp.lt.s32.totalorder %s845_s18, %s845_s18 }
  0x1b   :  { %p751_p11 = scmp.ne.s32.totalorder %s845_s18, %s750_s12  ;;  %p756_p13 = scmp.lt.s32.totalorder %s750_s12, %s750_s12 }
  0x1d   :  { %p757_p0 = por %p756_p13, %p755_p12 }
  0x1f   :  { %p758_p1 = pnand %p757_p0, %p751_p11 }
  0x21   :  { %761 = shalt.err (!%p758_p1)
}
  0x22   :  { %23 = dma.hbm_to_vmem [thread:$0]  %s993_s0, 128, %s845_s18, [#allocation4], %s814_s27, %s814_s27, %s815_s28  }
  0x23   :  { %s816_s14 = smov [#allocation8]   ;;  %s762_s19 = scalar_lea.hbm %s995_s2, 256 }
  0x24   :  { %s41_s15 = sshll.u32 %s816_s14, 4  ;;  %p763_p2 = scmp.ne.s32.totalorder %s995_s2, %s762_s19  ;;  %s42_s15 = int_to_ptr.vmem [resolvable:$true] %s41_s15 }
  0x25   :  { %p766_p3 = scmp.lt.u32.totalorder %s762_s19, %s995_s2 }
  0x27   :  { %p768_p4 = pnand %p766_p3, %p763_p2 }
  0x29   :  { %771 = shalt.err (!%p768_p4)
}
  0x2a   :  { %s772_s24 = scalar_lea.vmem %s42_s15, 256  ;;  %p777_p6 = scmp.lt.s32.totalorder %s42_s15, %s42_s15 }
  0x2b   :  { %p773_p5 = scmp.ne.s32.totalorder %s42_s15, %s772_s24  ;;  %p778_p7 = scmp.lt.s32.totalorder %s772_s24, %s772_s24 }
  0x2d   :  { %p779_p8 = por %p778_p7, %p777_p6 }
  0x2f   :  { %p780_p9 = pnand %p779_p8, %p773_p5 }
  0x31   :  { %783 = shalt.err (!%p780_p9)
}
  0x32   :  { %47 = dma.hbm_to_vmem [thread:$0]  %s995_s2, 256, %s42_s15, [#allocation7], %s814_s27, %s814_s27, %s815_s28  }
  0x33   :  { %806 = dma.done.wait [#allocation4], 128  }
  0x34   :  { %807 = vsyncadd [#allocation4], 4294967168 }
  0x35   :  { %808 = dma.done.wait [#allocation7], 384  }
  0x36   :  { %809 = vsyncadd [#allocation7], 4294966912  ;;  %vm64_vm0 = vcmask 254976   ;;  %v817_v0 = vmov 0.0   ;;  %vm818_vm1 = vmmov 0   ;;  %v698_v1 = vld [vmem:[#allocation6] sm:$0xff]  }
  0x37   :  { %620 = vmatprep.subr.bf16.mxu0 %v817_v0  ;;  %626 = vmatprep.subr.bf16.mxu1 %v817_v0  ;;  %65 = vst.msk [vmem:[#allocation2] sm:$0x3] %vm64_vm0, %v817_v0  ;;  %v904_v2 = vld [vmem:[#allocation8] sm:$0xff]   ;;  %v700_v3 = vld [vmem:[#allocation3] sm:$0xff]   ;;  %vm88_vm2 = vcmask 130048   ;;  %v907_v4 = vld [vmem:[#allocation8 + $0x8] sm:$0xff]  }
  0x38   :  { %622 = vmatprep.mubr.msk.bf16.mxu0 %vm818_vm1, %v817_v0  ;;  %630 = vmatprep.mubr.msk.bf16.mxu1 %vm818_vm1, %v817_v0  ;;  %vm151_vm3 = vcmask 261120   ;;  %v580_v7 = vld [vmem:[%s996_s3] ss:$0 sm:$0xff]  ;;  %vm198_vm4 = vcmask 253952   ;;  %vm249_vm5 = vcmask 254977   ;;  %vm302_vm6 = vcmask 256002  }
  0x39   :  { %621 = vmatpush3.bf16.msra.mxu0 %v698_v1  ;;  %627 = vmatpush3.bf16.msra.mxu1 %v904_v2  ;;  %vm355_vm7 = vcmask 257027   ;;  %vm560_vm8 = vcmask 261126   ;;  %s819_s3 = smov [#allocation9]  }
  0x3a   :  { %634 = vmatprep.subr.bf16.mxu0 %v817_v0  ;;  %628 = vmatprep.subr.bf16.mxu1 %v817_v0  ;;  %s567_s26 = sshll.u32 %s819_s3, 4  ;;  %s568_s26 = int_to_ptr.vmem [resolvable:$true] %s567_s26 }
  0x3b   :  { %s784_s29 = scalar_lea.vmem %s568_s26, 128  ;;  %p789_p11 = scmp.lt.s32.totalorder %s568_s26, %s568_s26 }
  0x3c   :  { %623 = vmatmul.mubr.msk.bf16.vlgmr.msra.gmra.mrb[0].mxu0 %vm88_vm2, %v700_v3  ;;  %p785_p10 = scmp.ne.s32.totalorder %s568_s26, %s784_s29  ;;  %p790_p12 = scmp.lt.s32.totalorder %s784_s29, %s784_s29 }
  0x3d   :  { %635 = vmatpush3.bf16.msra.mxu0 %v904_v2  ;;  %638 = vmatprep.mubr.msk.bf16.mxu0 %vm818_vm1, %v817_v0 }
  0x3e   :  { %v137_v5 = vld [vmem:[#allocation2] sm:$0x3]  ;;  %629 = vmatpush3.bf16.msra.mxu1 %v907_v4  ;;  %636 = vmatprep.subr.bf16.mxu0 %v817_v0  ;;  %p791_p13 = por %p790_p12, %p789_p11 }
  0x3f   :  { %v138_v6 = vpack.c.bf16 %v137_v5, %v137_v5  ;;  %642 = vmatprep.subr.bf16.mxu1 %v817_v0 }
  0x40   :  { %p792_p0 = pnand %p791_p13, %p785_p10 }
  0x41   :  { %631 = vmatmul.mubr.msk.bf16.vlgmr.msra.gmra.mrb[0].mxu1 %vm151_vm3, %v138_v6  ;;  %637 = vmatpush3.bf16.msra.mxu0 %v907_v4 }
  0x42   :  { %643 = vmatpush3.bf16.msra.mxu1 %v904_v2  ;;  %646 = vmatprep.mubr.msk.bf16.mxu1 %vm818_vm1, %v817_v0 }
  0x43   :  { %644 = vmatprep.subr.bf16.mxu1 %v817_v0  ;;  %650 = vmatprep.subr.bf16.mxu0 %v817_v0 }
  0x46   :  { %645 = vmatpush3.bf16.msra.mxu1 %v907_v4 }
  0x47   :  { %658 = vmatprep.subr.bf16.mxu1 %v817_v0 }
 0x10f   :  { %v126_v8 = vpop.f32.mrb[0].mxu0 }
 0x110   :  { %v624_v9 = vpop.f32.mrb[1].mxu0  ;;  %v127_v10 = vadd.f32 %v580_v7, %v126_v8 }
 0x111   :  { %v129_v11 = vpop.f32.mrb[2].mxu0 }
 0x112   :  { %v929_v12 = vadd.f32 %v580_v7, %v129_v11  ;;  %v625_v13 = vpop.f32.mrb[3].mxu0 }
 0x114   :  { %v189_v14 = vpop.f32.mrb[0].mxu1 }
 0x115   :  { %v195_v15 = vadd.f32 %v189_v14, %v127_v10  ;;  %v632_v16 = vpop.f32.mrb[1].mxu1 }
 0x116   :  { %v192_v17 = vpop.f32.mrb[2].mxu1 }
 0x117   :  { %702 = vtanh.f32 %v195_v15  ;;  %v633_v18 = vpop.f32.mrb[3].mxu1 }
 0x121   :  { %v703_v19 = vpop.eup %702 }
 0x122   :  { %v197_v20 = vpack.c.bf16 %v703_v19, %v703_v19 }
 0x124   :  { %199 = vst.msk [vmem:[#allocation9] sm:$0x1] %vm198_vm4, %v197_v20  ;;  %639 = vmatmul.mubr.msk.bf16.vlgmr.msra.gmra.mrb[4].mxu0 %vm151_vm3, %v197_v20 }
 0x125   :  { %651 = vmatpush3.bf16.msra.mxu0 %v904_v2  ;;  %654 = vmatprep.mubr.msk.bf16.mxu0 %vm818_vm1, %v817_v0 }
 0x126   :  { %652 = vmatprep.subr.bf16.mxu0 %v817_v0 }
 0x129   :  { %653 = vmatpush3.bf16.msra.mxu0 %v907_v4 }
 0x12a   :  { %666 = vmatprep.subr.bf16.mxu0 %v817_v0 }
 0x1f7   :  { %v237_v21 = vpop.f32.mrb[4].mxu0 }
 0x1f8   :  { %v244_v22 = vrot.slane %v237_v21, 6  ;;  %v640_v23 = vpop.f32.mrb[5].mxu0 }
 0x1f9   :  { %v240_v24 = vpop.f32.mrb[6].mxu0 }
 0x1fa   :  { %v246_v25 = vadd.f32 %v244_v22, %v127_v10  ;;  %v641_v26 = vpop.f32.mrb[7].mxu0 }
 0x1fc   :  { %704 = vtanh.f32 %v246_v25 }
 0x206   :  { %v705_v27 = vpop.eup %704 }
 0x207   :  { %v248_v28 = vpack.c.bf16 %v705_v27, %v705_v27 }
 0x209   :  { %250 = vst.msk [vmem:[#allocation9] sm:$0x2] %vm249_vm5, %v248_v28  ;;  %v252_v29 = vrot.slane %v248_v28, 1 }
 0x20b   :  { %647 = vmatmul.mubr.msk.bf16.vlgmr.msra.gmra.mrb[4].mxu1 %vm151_vm3, %v252_v29 }
 0x20c   :  { %659 = vmatpush3.bf16.msra.mxu1 %v904_v2  ;;  %662 = vmatprep.mubr.msk.bf16.mxu1 %vm818_vm1, %v817_v0 }
 0x20d   :  { %660 = vmatprep.subr.bf16.mxu1 %v817_v0 }
 0x210   :  { %661 = vmatpush3.bf16.msra.mxu1 %v907_v4 }
 0x211   :  { %674 = vmatprep.subr.bf16.mxu1 %v817_v0 }
 0x2de   :  { %v290_v30 = vpop.f32.mrb[4].mxu1 }
 0x2df   :  { %v297_v31 = vrot.slane %v290_v30, 4  ;;  %v648_v32 = vpop.f32.mrb[5].mxu1 }
 0x2e0   :  { %v293_v33 = vpop.f32.mrb[6].mxu1 }
 0x2e1   :  { %v299_v34 = vadd.f32 %v297_v31, %v127_v10  ;;  %v649_v35 = vpop.f32.mrb[7].mxu1 }
 0x2e3   :  { %706 = vtanh.f32 %v299_v34 }
 0x2ed   :  { %v707_v36 = vpop.eup %706 }
 0x2ee   :  { %v301_v37 = vpack.c.bf16 %v707_v36, %v707_v36 }
 0x2f0   :  { %303 = vst.msk [vmem:[#allocation9] sm:$0x4] %vm302_vm6, %v301_v37  ;;  %v305_v38 = vrot.slane %v301_v37, 2 }
 0x2f2   :  { %655 = vmatmul.mubr.msk.bf16.vlgmr.msra.gmra.mrb[8].mxu0 %vm151_vm3, %v305_v38 }
 0x2f3   :  { %667 = vmatpush3.bf16.msra.mxu0 %v904_v2  ;;  %670 = vmatprep.mubr.msk.bf16.mxu0 %vm818_vm1, %v817_v0 }
 0x2f4   :  { %668 = vmatprep.subr.bf16.mxu0 %v817_v0 }
 0x2f7   :  { %669 = vmatpush3.bf16.msra.mxu0 %v907_v4 }
 0x2f8   :  { %682 = vmatprep.subr.bf16.mxu0 %v817_v0 }
 0x3c5   :  { %v343_v39 = vpop.f32.mrb[8].mxu0 }
 0x3c6   :  { %v350_v40 = vrot.slane %v343_v39, 2  ;;  %v656_v41 = vpop.f32.mrb[9].mxu0 }
 0x3c7   :  { %v346_v42 = vpop.f32.mrb[10].mxu0 }
 0x3c8   :  { %v352_v43 = vadd.f32 %v350_v40, %v127_v10  ;;  %v657_v44 = vpop.f32.mrb[11].mxu0 }
 0x3ca   :  { %708 = vtanh.f32 %v352_v43 }
 0x3d4   :  { %v709_v45 = vpop.eup %708 }
 0x3d5   :  { %v354_v46 = vpack.c.bf16 %v709_v45, %v709_v45 }
 0x3d7   :  { %356 = vst.msk [vmem:[#allocation9] sm:$0x8] %vm355_vm7, %v354_v46  ;;  %v358_v47 = vrot.slane %v354_v46, 3 }
 0x3d9   :  { %663 = vmatmul.mubr.msk.bf16.vlgmr.msra.gmra.mrb[8].mxu1 %vm151_vm3, %v358_v47 }
 0x3da   :  { %675 = vmatpush3.bf16.msra.mxu1 %v904_v2  ;;  %678 = vmatprep.mubr.msk.bf16.mxu1 %vm818_vm1, %v817_v0 }
 0x3db   :  { %676 = vmatprep.subr.bf16.mxu1 %v817_v0 }
 0x3de   :  { %677 = vmatpush3.bf16.msra.mxu1 %v907_v4 }
 0x4ac   :  { %v396_v48 = vpop.f32.mrb[8].mxu1 }
 0x4ad   :  { %v402_v49 = vadd.f32 %v396_v48, %v929_v12  ;;  %v664_v50 = vpop.f32.mrb[9].mxu1 }
 0x4ae   :  { %v399_v51 = vpop.f32.mrb[10].mxu1 }
 0x4af   :  { %710 = vtanh.f32 %v402_v49  ;;  %v665_v52 = vpop.f32.mrb[11].mxu1 }
 0x4b9   :  { %v711_v53 = vpop.eup %710 }
 0x4ba   :  { %v404_v54 = vpack.c.bf16 %v711_v53, %v711_v53 }
 0x4bc   :  { %405 = vst.msk [vmem:[#allocation9 + $0x4] sm:$0x1] %vm198_vm4, %v404_v54  ;;  %671 = vmatmul.mubr.msk.bf16.vlgmr.msra.gmra.mrb[12].mxu0 %vm151_vm3, %v404_v54 }
 0x4bd   :  { %683 = vmatpush3.bf16.msra.mxu0 %v904_v2  ;;  %686 = vmatprep.mubr.msk.bf16.mxu0 %vm818_vm1, %v817_v0 }
 0x4be   :  { %684 = vmatprep.subr.bf16.mxu0 %v817_v0 }
 0x4c1   :  { %685 = vmatpush3.bf16.msra.mxu0 %v907_v4 }
 0x58f   :  { %v443_v55 = vpop.f32.mrb[12].mxu0 }
 0x590   :  { %v450_v56 = vrot.slane %v443_v55, 6  ;;  %v672_v57 = vpop.f32.mrb[13].mxu0 }
 0x591   :  { %v446_v58 = vpop.f32.mrb[14].mxu0 }
 0x592   :  { %v452_v59 = vadd.f32 %v450_v56, %v929_v12  ;;  %v673_v60 = vpop.f32.mrb[15].mxu0 }
 0x594   :  { %712 = vtanh.f32 %v452_v59 }
 0x59e   :  { %v713_v61 = vpop.eup %712 }
 0x59f   :  { %v454_v62 = vpack.c.bf16 %v713_v61, %v713_v61 }
 0x5a1   :  { %455 = vst.msk [vmem:[#allocation9 + $0x4] sm:$0x2] %vm249_vm5, %v454_v62  ;;  %v457_v63 = vrot.slane %v454_v62, 1 }
 0x5a3   :  { %679 = vmatmul.mubr.msk.bf16.vlgmr.msra.gmra.mrb[12].mxu1 %vm151_vm3, %v457_v63 }
 0x676   :  { %v495_v1 = vpop.f32.mrb[12].mxu1 }
 0x677   :  { %v502_v2 = vrot.slane %v495_v1, 4  ;;  %v680_v0 = vpop.f32.mrb[13].mxu1 }
 0x678   :  { %v498_v3 = vpop.f32.mrb[14].mxu1 }
 0x679   :  { %v504_v4 = vadd.f32 %v502_v2, %v929_v12  ;;  %v681_v5 = vpop.f32.mrb[15].mxu1 }
 0x67b   :  { %714 = vtanh.f32 %v504_v4 }
 0x685   :  { %v715_v6 = vpop.eup %714 }
 0x686   :  { %v506_v7 = vpack.c.bf16 %v715_v6, %v715_v6 }
 0x688   :  { %507 = vst.msk [vmem:[#allocation9 + $0x4] sm:$0x4] %vm302_vm6, %v506_v7  ;;  %v509_v8 = vrot.slane %v506_v7, 2 }
 0x68a   :  { %687 = vmatmul.mubr.msk.bf16.vlgmr.msra.gmra.mrb[16].mxu0 %vm151_vm3, %v509_v8 }
 0x75d   :  { %v547_v9 = vpop.f32.mrb[16].mxu0 }
 0x75e   :  { %v554_v10 = vrot.slane %v547_v9, 2  ;;  %v688_v11 = vpop.f32.mrb[17].mxu0 }
 0x75f   :  { %v550_v13 = vpop.f32.mrb[18].mxu0 }
 0x760   :  { %v556_v14 = vadd.f32 %v554_v10, %v929_v12  ;;  %v689_v15 = vpop.f32.mrb[19].mxu0 }
 0x762   :  { %716 = vtanh.f32 %v556_v14 }
 0x76c   :  { %v717_v16 = vpop.eup %716 }
 0x76d   :  { %v558_v17 = vpack.c.bf16 %v717_v16, %v717_v16  ;;  %561 = vst.msk [vmem:[#allocation2 - $0x6] sm:$0xc0] %vm560_vm8, %v717_v16 }
 0x76f   :  { %559 = vst.msk [vmem:[#allocation9 + $0x4] sm:$0x8] %vm355_vm7, %v558_v17 }
 0x770   :  { %795 = shalt.err (!%p792_p0)
}
 0x771   :  { %s796_s6 = scalar_lea.hbm %s997_s4, 128 }
 0x772   :  { %p797_p1 = scmp.ne.s32.totalorder %s997_s4, %s796_s6  ;;  %p800_p2 = scmp.lt.u32.totalorder %s796_s6, %s997_s4 }
 0x774   :  { %p802_p3 = pnand %p800_p2, %p797_p1 }
 0x776   :  { %805 = shalt.err (!%p802_p3)
}
 0x777   :  { %573 = dma.vmem_to_hbm [thread:$0]  %s568_s26, 128, %s997_s4, [#allocation5], %s814_s27, %s814_s27, %s815_s28  }
 0x778   :  { %810 = dma.done.wait [#allocation5], 128  }
 0x779   :  { %811 = vsyncadd [#allocation5], 4294967168 }
 0x77a   :  { %577 = vsyncpa [#allocation4], 1 }
 0x77b   :  { %578 = vsyncpa [#allocation7], 1 }
 0x77c   :  { %579 = vsyncpa [#allocation5], 1 }

</bundles_post_ra>
